<compile_context>
chip_gen: v6e
topology: v6e:2x2x1
jax: 0.10.0
libtpu: 0.0.40
codegen_flags: <defaults>
</compile_context>

<pallas_src>
import numpy as np
import jax
import jax.numpy as jnp
from jax.experimental import pallas as pl
from jax.experimental.pallas import tpu as pltpu

EMB = 32            # embedding_size
HID = 32            # hidden_size
NACT = 4            # num_actions
NRES = 4            # number of residual blocks


# ---------------------------------------------------------------------------
# Kernel: batch-in-lanes.  x_ref [EMB, tb], act_ref [1, tb] int32,
# w0_ref [HID, EMB] (inp_net state path, transposed),
# wf_ref [EMB, HID] (folded residual+out_net chain, transposed),
# t_ref  [HID+EMB, NACT] (transposed action+bias tables of both layers),
# out_ref [EMB, tb].
# ---------------------------------------------------------------------------
def _fm_kernel(x_ref, act_ref, w0_ref, wf_ref, t_ref, out_ref):
    tb = x_ref.shape[1]
    x = x_ref[...]                                   # [EMB, tb] f32
    acts = act_ref[...]                              # [1, tb]  int32

    # one_hot(actions) laid out [NACT, tb] (batch in lanes)
    onehot_t = (jax.lax.broadcasted_iota(jnp.int32, (NACT, tb), 0) == acts
                ).astype(jnp.float32)

    # One small K=4 dot covers the action contribution + bias of BOTH layers.
    act_all = jnp.dot(t_ref[...], onehot_t,
                      preferred_element_type=jnp.float32)        # [HID+EMB, tb]

    # inp_net: relu(W0s^T @ x + a0)
    h = jnp.dot(w0_ref[...], x, preferred_element_type=jnp.float32) + act_all[:HID, :]
    h = jnp.maximum(h, 0.0)

    # folded residual chain + out_net: W_fold^T @ h + a_fold
    out = jnp.dot(wf_ref[...], h, preferred_element_type=jnp.float32) + act_all[HID:, :]
    out_ref[...] = out.astype(out_ref.dtype)


def _pick_batch_tile(B, block_b):
    """Lane-aligned batch tile; guarantees >=2 grid steps for large batches."""
    if B <= 256:
        return B                       # single full block (last dim == full dim)
    tb = min(block_b, -(-B // 2))      # cap at ceil(B/2) -> at least 2 grid steps
    return max(128, (tb // 128) * 128)


def forward_model_pallas(states, actions, packed, *, block_b=2048):
    """states: [B, EMB] f32, actions: [B, 1] int -> [B, EMB] f32."""
    B = states.shape[0]
    tb = _pick_batch_tile(B, block_b)
    Bp = pl.cdiv(B, tb) * tb           # pad ragged batches instead of asserting

    x_t = states.T                                       # [EMB, B]
    a_t = actions.reshape(B, 1).T.astype(jnp.int32)      # [1, B]
    if Bp != B:
        x_t = jnp.pad(x_t, ((0, 0), (0, Bp - B)))
        a_t = jnp.pad(a_t, ((0, 0), (0, Bp - B)))

    out_t = pl.pallas_call(
        _fm_kernel,
        out_shape=jax.ShapeDtypeStruct((EMB, Bp), jnp.float32),
        grid_spec=pltpu.PrefetchScalarGridSpec(
            num_scalar_prefetch=0,
            grid=(Bp // tb,),
            in_specs=[
                pl.BlockSpec((EMB, tb), lambda i: (0, i)),
                pl.BlockSpec((1, tb), lambda i: (0, i)),
                # tiny weights stay resident across the batch grid
                pl.BlockSpec((HID, EMB), lambda i: (0, 0)),
                pl.BlockSpec((EMB, HID), lambda i: (0, 0)),
                pl.BlockSpec((HID + EMB, NACT), lambda i: (0, 0)),
            ],
            out_specs=pl.BlockSpec((EMB, tb), lambda i: (0, i)),
        ),
        compiler_params=pltpu.CompilerParams(
            dimension_semantics=("parallel",)),   # both TCs on v7x for big batches
    )(x_t, a_t, packed["w0_t"], packed["wf_t"], packed["t_all_t"])

    return out_t[:, :B].T


# ---------------------------------------------------------------------------
# Parameter construction / packing / reference
# ---------------------------------------------------------------------------
def init_raw_params(key):
    """PyTorch-Linear-style init (uniform +-1/sqrt(fan_in)), unfused layout."""
    def linear(k, fan_in, fan_out):
        kw, kb = jax.random.split(k)
        bound = 1.0 / jnp.sqrt(fan_in)
        w = jax.random.uniform(kw, (fan_in, fan_out), jnp.float32, -bound, bound)
        b = jax.random.uniform(kb, (fan_out,), jnp.float32, -bound, bound)
        return w, b

    keys = jax.random.split(key, 2 + NRES)
    w_in, b_in = linear(keys[0], EMB + NACT, HID)                       # inp_net
    res = [linear(keys[1 + i], HID + NACT, HID) for i in range(NRES)]   # layer1's
    w_out, b_out = linear(keys[1 + NRES], HID + NACT, EMB)              # out_net
    # NOTE: each FMResidualBlock also owns a layer2 in PyTorch; it is dead code
    # in the reference forward, so it is not instantiated here.
    return {"w_in": w_in, "b_in": b_in,
            "w_res": [r[0] for r in res], "b_res": [r[1] for r in res],
            "w_out": w_out, "b_out": b_out}


def pack_params(raw):
    """Fold (host-side, float64 so the fold is exact at f32):
         * identity skips into the residual weights (W_i + I),
         * the whole post-ReLU affine chain (res0..res3, out_net) into one
           [HID, EMB] matrix and one [NACT, EMB] action/bias table,
         * inp_net's action path + bias into a [NACT, HID] table,
       then transpose everything for the batch-in-lanes kernel layout."""
    f64 = lambda a: np.asarray(a, dtype=np.float64)
    eye = np.eye(HID, dtype=np.float64)

    # inp_net
    W0s = f64(raw["w_in"])[:EMB]                                    # [EMB, HID]
    T0 = f64(raw["w_in"])[EMB:] + f64(raw["b_in"])[None, :]         # [NACT, HID]

    # residual layer1's with identity skip folded in
    Ws = [f64(raw["w_res"][i])[:HID] + eye for i in range(NRES)]    # [HID, HID]
    Ts = [f64(raw["w_res"][i])[HID:] + f64(raw["b_res"][i])[None, :]
          for i in range(NRES)]                                     # [NACT, HID]
    Wo = f64(raw["w_out"])[:HID]                                    # [HID, EMB]
    To = f64(raw["w_out"])[HID:] + f64(raw["b_out"])[None, :]       # [NACT, EMB]

    # Collapse h -> (((h@W0'+a0)@W1'+a1)...)@Wo + ao  into  h@W_fold + A_fold
    W_fold, A_fold = Ws[0], Ts[0]
    for i in range(1, NRES):
        A_fold = A_fold @ Ws[i] + Ts[i]
        W_fold = W_fold @ Ws[i]
    A_fold = A_fold @ Wo + To                                       # [NACT, EMB]
    W_fold = W_fold @ Wo                                            # [HID, EMB]

    return {
        "w0_t": jnp.asarray(W0s.T, dtype=jnp.float32),              # [HID, EMB]
        "wf_t": jnp.asarray(W_fold.T, dtype=jnp.float32),           # [EMB, HID]
        "t_all_t": jnp.asarray(np.concatenate([T0.T, A_fold.T], axis=0),
                               dtype=jnp.float32),                  # [HID+EMB, NACT]
    }


def forward_model_ref(states, actions, raw):
    """Pure-JAX reference with exact PyTorch-forward semantics (unfused)."""
    P = jax.lax.Precision.HIGHEST
    onehot = jax.nn.one_hot(actions[:, 0], NACT, dtype=jnp.float32)
    h = jnp.dot(jnp.concatenate([states, onehot], 1), raw["w_in"], precision=P) + raw["b_in"]
    h = jnp.maximum(h, 0.0)
    for i in range(NRES):
        cat = jnp.concatenate([h, onehot], 1)
        h = h + (jnp.dot(cat, raw["w_res"][i], precision=P) + raw["b_res"][i])
    cat = jnp.concatenate([h, onehot], 1)
    return jnp.dot(cat, raw["w_out"], precision=P) + raw["b_out"]


if __name__ == "__main__":
    key = jax.random.PRNGKey(0)
    k_param, k_data = jax.random.split(key)

    raw = init_raw_params(k_param)
    packed = pack_params(raw)

    # batch=8: single full block; batch=300: multi-step grid with padded tail.
    for batch in (8, 300):
        ks, ka = jax.random.split(jax.random.fold_in(k_data, batch))
        states = jax.random.normal(ks, (batch, EMB), jnp.float32)
        actions = jax.random.randint(ka, (batch, 1), 0, NACT, jnp.int32)

        out = jax.block_until_ready(forward_model_pallas(states, actions, packed))
        ref = forward_model_ref(states, actions, raw)

        assert out.shape == (batch, EMB)
        # 2e-5 budget: the host-side affine-chain fold reassociates f32 products
        # (expected discrepancy vs the unfused reference is ~1e-6).
        err = jnp.max(jnp.abs(out - ref))
        assert jnp.allclose(out, ref, atol=2e-5, rtol=1e-5), (
            f"mismatch vs JAX reference at batch={batch}: max abs diff {err:.3e}")

    print("KERNEL_OK")
</pallas_src>

<mosaic_0001>
module attributes {stable_mosaic.version = 11 : i64} {
  func.func @_fm_kernel(%arg0: i32, %arg1: memref<32x8xf32, #tpu.memory_space<vmem>>, %arg2: memref<1x8xi32, #tpu.memory_space<vmem>>, %arg3: memref<32x32xf32, #tpu.memory_space<vmem>>, %arg4: memref<32x32xf32, #tpu.memory_space<vmem>>, %arg5: memref<64x4xf32, #tpu.memory_space<vmem>>, %arg6: memref<32x8xf32, #tpu.memory_space<vmem>>) attributes {dimension_semantics = [#tpu.dimension_semantics<parallel>], iteration_bounds = array<i64: 1>, scalar_prefetch = 0 : i64, scratch_operands = 0 : i64, tpu.core_type = #tpu.core_type<tc>, window_params = [{transform_indices = @transform_0, window_bounds = array<i64: 32, 8>}, {transform_indices = @transform_1, window_bounds = array<i64: 1, 8>}, {pipeline_mode = #tpu.pipeline_mode<synchronous>, transform_indices = @transform_2, window_bounds = array<i64: 32, 32>}, {pipeline_mode = #tpu.pipeline_mode<synchronous>, transform_indices = @transform_3, window_bounds = array<i64: 32, 32>}, {pipeline_mode = #tpu.pipeline_mode<synchronous>, transform_indices = @transform_4, window_bounds = array<i64: 64, 4>}, {transform_indices = @transform_5, window_bounds = array<i64: 32, 8>}]} {
    %c0 = arith.constant 0 : index
    %c0_0 = arith.constant 0 : index
    %0 = vector.load %arg1[%c0, %c0_0] : memref<32x8xf32, #tpu.memory_space<vmem>>, vector<32x8xf32>
    %c0_1 = arith.constant 0 : index
    %c0_2 = arith.constant 0 : index
    %1 = vector.load %arg2[%c0_1, %c0_2] : memref<1x8xi32, #tpu.memory_space<vmem>>, vector<1x8xi32>
    %2 = tpu.iota {dimensions = array<i32: 0>} : vector<4x8xi32>
    %3 = vector.broadcast %1 : vector<1x8xi32> to vector<4x8xi32>
    %4 = arith.cmpi eq, %2, %3 : vector<4x8xi32>
    %5 = arith.extui %4 : vector<4x8xi1> to vector<4x8xi32>
    %6 = arith.sitofp %5 : vector<4x8xi32> to vector<4x8xf32>
    %c0_3 = arith.constant 0 : index
    %c0_4 = arith.constant 0 : index
    %7 = vector.load %arg5[%c0_3, %c0_4] : memref<64x4xf32, #tpu.memory_space<vmem>>, vector<64x4xf32>
    %cst = arith.constant dense<0.000000e+00> : vector<64x8xf32>
    %8 = tpu.matmul %7, %6, %cst {dimension_numbers = #tpu.dot_dimension_numbers<[1], [0], [0], [1], [0, 0, 1, 1], [], []>} : vector<64x4xf32>, vector<4x8xf32>, vector<64x8xf32> -> vector<64x8xf32>
    %c0_5 = arith.constant 0 : index
    %c0_6 = arith.constant 0 : index
    %9 = vector.load %arg3[%c0_5, %c0_6] : memref<32x32xf32, #tpu.memory_space<vmem>>, vector<32x32xf32>
    %cst_7 = arith.constant dense<0.000000e+00> : vector<32x8xf32>
    %10 = tpu.matmul %9, %0, %cst_7 {dimension_numbers = #tpu.dot_dimension_numbers<[1], [0], [0], [1], [0, 0, 1, 1], [], []>} : vector<32x32xf32>, vector<32x8xf32>, vector<32x8xf32> -> vector<32x8xf32>
    %11 = vector.extract_strided_slice %8 {offsets = [0, 0], sizes = [32, 8], strides = [1, 1]} : vector<64x8xf32> to vector<32x8xf32>
    %12 = arith.addf %10, %11 : vector<32x8xf32>
    %cst_8 = arith.constant 0.000000e+00 : f32
    %13 = vector.broadcast %cst_8 : f32 to vector<32x8xf32>
    %14 = arith.maximumf %12, %13 : vector<32x8xf32>
    %c0_9 = arith.constant 0 : index
    %c0_10 = arith.constant 0 : index
    %15 = vector.load %arg4[%c0_9, %c0_10] : memref<32x32xf32, #tpu.memory_space<vmem>>, vector<32x32xf32>
    %cst_11 = arith.constant dense<0.000000e+00> : vector<32x8xf32>
    %16 = tpu.matmul %15, %14, %cst_11 {dimension_numbers = #tpu.dot_dimension_numbers<[1], [0], [0], [1], [0, 0, 1, 1], [], []>} : vector<32x32xf32>, vector<32x8xf32>, vector<32x8xf32> -> vector<32x8xf32>
    %17 = vector.extract_strided_slice %8 {offsets = [32, 0], sizes = [32, 8], strides = [1, 1]} : vector<64x8xf32> to vector<32x8xf32>
    %18 = arith.addf %16, %17 : vector<32x8xf32>
    %c0_12 = arith.constant 0 : index
    %c0_13 = arith.constant 0 : index
    %19 = vector.load %arg6[%c0_12, %c0_13] : memref<32x8xf32, #tpu.memory_space<vmem>>, vector<32x8xf32>
    tpu.vector_store %arg6[%c0_12, %c0_13], %18 {strides = array<i32>} : memref<32x8xf32, #tpu.memory_space<vmem>>, vector<32x8xf32>,
    return
  }
  func.func @transform_0(%arg0: i32) -> (i32, i32) {
    %c0_i32 = arith.constant 0 : i32
    %c0_i32_0 = arith.constant 0 : i32
    return %c0_i32, %arg0 : i32, i32
  }
  func.func @transform_1(%arg0: i32) -> (i32, i32) {
    %c0_i32 = arith.constant 0 : i32
    %c0_i32_0 = arith.constant 0 : i32
    return %c0_i32, %arg0 : i32, i32
  }
  func.func @transform_2(%arg0: i32) -> (i32, i32) {
    %c0_i32 = arith.constant 0 : i32
    %c0_i32_0 = arith.constant 0 : i32
    %c0_i32_1 = arith.constant 0 : i32
    return %c0_i32, %c0_i32_0 : i32, i32
  }
  func.func @transform_3(%arg0: i32) -> (i32, i32) {
    %c0_i32 = arith.constant 0 : i32
    %c0_i32_0 = arith.constant 0 : i32
    %c0_i32_1 = arith.constant 0 : i32
    return %c0_i32, %c0_i32_0 : i32, i32
  }
  func.func @transform_4(%arg0: i32) -> (i32, i32) {
    %c0_i32 = arith.constant 0 : i32
    %c0_i32_0 = arith.constant 0 : i32
    %c0_i32_1 = arith.constant 0 : i32
    return %c0_i32, %c0_i32_0 : i32, i32
  }
  func.func @transform_5(%arg0: i32) -> (i32, i32) {
    %c0_i32 = arith.constant 0 : i32
    %c0_i32_0 = arith.constant 0 : i32
    return %c0_i32, %arg0 : i32, i32
  }
}

</mosaic_0001>

<bundles_post_ra>
// kernel: tpu_custom_call.1
= control target key start
LH: loop header
LB: loop body
LE: loop exit
PB: predicated region body
PF: predicated region fallthrough
CT: control target
= control target key end

     0   :  { %v25_v0 = vlaneseq  ;;  %vm42_vm0 = vcmask 31744   ;;  %vm180_vm1 = vcmask 261120   ;;  %vm67_vm2 = vcmask 1043456   ;;  %s609_s0 = inlined_call_operand.vmem [shape: f32[32,8], index: 0, kind: input, shape index: {}]   ;;  %s610_s1 = inlined_call_operand.vmem [shape: s32[1,8], index: 1, kind: input, shape index: {}]   ;;  %s611_s4 = inlined_call_operand.vmem [shape: f32[64,4], index: 4, kind: input, shape index: {}]   ;;  %s612_s2 = inlined_call_operand.vmem [shape: f32[32,32], index: 2, kind: input, shape index: {}]   ;;  %s613_s3 = inlined_call_operand.vmem [shape: f32[32,32], index: 3, kind: input, shape index: {}]   ;;  %s614_s5 = inlined_call_operand.vmem [shape: f32[32,8], index: 5, kind: output, shape index: {}]  }
   0x1   :  { %v23_v1 = vld [vmem:[%s609_s0 + $0x18] sm:$0xff]  ;;  %v22_v2 = vld [vmem:[%s609_s0 + $0x10] sm:$0xff]  ;;  %v392_v3 = vld [vmem:[%s610_s1] ss:$0 sm:$0xff]  ;;  %v487_v8 = vmov 0.0   ;;  %vm383_vm4 = vcmask 64512  }
   0x2   :  { %450 = vmatprep.subr.mxu1 %v23_v1  ;;  %v26_v4 = vshrl.u32 %v25_v0, 7  ;;  %v34_v5 = vld [vmem:[%s611_s4] sm:$0xff]  ;;  %v21_v6 = vld [vmem:[%s609_s0 + $0x8] sm:$0xff]  ;;  %v36_v12 = vld [vmem:[%s611_s4 + $0x10] sm:$0xff] }
   0x3   :  { %451 = vmatpush3.msra.mxu1 %v23_v1  ;;  %438 = vmatprep.mubr.msk.f32.mxu0 %vm42_vm0, %v34_v5  ;;  %v176_v7 = vld [vmem:[%s612_s2] sm:$0xff]  ;;  %v35_v10 = vld [vmem:[%s611_s4 + $0x8] sm:$0xff]  ;;  %v178_v14 = vld [vmem:[%s612_s2 + $0x10] sm:$0xff] }
   0x4   :  { %452 = vmatprep.subr.mxu1 %v22_v2  ;;  %vm31_vm3 = vcmp.eq.s32.totalorder %v26_v4, %v392_v3  ;;  %458 = vmatprep.mubr.msk.f32.mxu1 %vm180_vm1, %v176_v7  ;;  %v20_v11 = vld [vmem:[%s609_s0] sm:$0xff]  ;;  %v177_v13 = vld [vmem:[%s612_s2 + $0x8] sm:$0xff]  ;;  %v37_v15 = vld [vmem:[%s611_s4 + $0x18] sm:$0xff] }
   0x5   :  { %453 = vmatpush3.msra.mxu1 %v22_v2  ;;  %v393_v9 = vsel %vm31_vm3, 1.0, %v487_v8  ;;  %v179_v16 = vld [vmem:[%s612_s2 + $0x18] sm:$0xff]  ;;  %v38_v17 = vld [vmem:[%s611_s4 + $0x20] sm:$0xff]  ;;  %v39_v18 = vld [vmem:[%s611_s4 + $0x28] sm:$0xff] }
   0x6   :  { %436 = vmatprep.subr.msk.mxu0 %vm67_vm2, %v393_v9  ;;  %454 = vmatprep.subr.mxu1 %v21_v6  ;;  %v40_v19 = vld [vmem:[%s611_s4 + $0x30] sm:$0xff]  ;;  %v41_v20 = vld [vmem:[%s611_s4 + $0x38] sm:$0xff]  ;;  %v282_v21 = vld [vmem:[%s613_s3] sm:$0xff] }
   0x7   :  { %437 = vmatpush3.msk.msra.mxu0 %vm67_vm2, %v393_v9  ;;  %455 = vmatpush3.msra.mxu1 %v21_v6  ;;  %v284_v22 = vld [vmem:[%s613_s3 + $0x10] sm:$0xff]  ;;  %v283_v39 = vld [vmem:[%s613_s3 + $0x8] sm:$0xff]  ;;  %v285_v40 = vld [vmem:[%s613_s3 + $0x18] sm:$0xff] }
   0x8   :  { %439 = vmatmul.mubr.msk.f32.vlgmr.msra.gmra.mxu0 %vm42_vm0, %v35_v10  ;;  %456 = vmatprep.subr.mxu1 %v20_v11 }
   0x9   :  { %457 = vmatpush3.msra.mxu1 %v20_v11  ;;  %441 = vmatprep.mubr.msk.f32.mxu0 %vm42_vm0, %v36_v12 }
   0xa   :  { %459 = vmatmul.mubr.msk.f32.vlgmr.msra.gmra.mxu1 %vm180_vm1, %v177_v13 }
   0xb   :  { %461 = vmatprep.mubr.msk.f32.mxu1 %vm180_vm1, %v178_v14 }
   0xc   :  { %442 = vmatmul.mubr.msk.f32.gmra.mxu0 %vm42_vm0, %v37_v15 }
   0xd   :  { %444 = vmatprep.mubr.msk.f32.mxu0 %vm42_vm0, %v38_v17 }
   0xe   :  { %462 = vmatmul.mubr.msk.f32.gmra.mxu1 %vm180_vm1, %v179_v16 }
   0xf   :  { %475 = vmatprep.mubr.msk.f32.mxu1 %vm180_vm1, %v284_v22 }
  0x10   :  { %445 = vmatmul.mubr.msk.f32.gmra.mxu0 %vm42_vm0, %v39_v18 }
  0x11   :  { %447 = vmatprep.mubr.msk.f32.mxu0 %vm42_vm0, %v40_v19 }
  0x14   :  { %448 = vmatmul.mubr.msk.f32.gmra.mxu0 %vm42_vm0, %v41_v20 }
  0x15   :  { %472 = vmatprep.mubr.msk.f32.mxu0 %vm180_vm1, %v282_v21 }
  0xc8   :  { %v440_v23 = vpop.f32.mrf.mxu0 }
  0xca   :  { %v137_v24 = vpop.f32.mrf.mxu0  ;;  %v460_v25 = vpop.f32.mrf.mxu1 }
  0xcb   :  { %v265_v32 = vadd.f32 %v460_v25, %v440_v23 }
  0xcc   :  { %v443_v26 = vpop.f32.mrf.mxu0  ;;  %v259_v27 = vpop.f32.mrf.mxu1 }
  0xcd   :  { %v260_v35 = vadd.f32 %v259_v27, %v137_v24  ;;  %v279_v37 = vmax.f32 %v265_v32, 0.0 }
  0xce   :  { %v463_v28 = vpop.f32.mrf.mxu1  ;;  %v147_v30 = vpop.f32.mrf.mxu0 }
  0xcf   :  { %v275_v29 = vadd.f32 %v463_v28, %v443_v26  ;;  %v278_v38 = vmax.f32 %v260_v35, 0.0 }
  0xd0   :  { %v269_v31 = vpop.f32.mrf.mxu1  ;;  %v446_v41 = vpop.f32.mrf.mxu0 }
  0xd1   :  { %v281_v33 = vmax.f32 %v275_v29, 0.0  ;;  %v270_v34 = vadd.f32 %v269_v31, %v147_v30 }
  0xd2   :  { %v157_v42 = vpop.f32.mrf.mxu0 }
  0xd3   :  { %v280_v36 = vmax.f32 %v270_v34, 0.0  ;;  %464 = vmatprep.subr.mxu0 %v281_v33  ;;  %478 = vmatprep.subr.mxu1 %v281_v33 }
  0xd4   :  { %465 = vmatpush3.msra.mxu0 %v281_v33  ;;  %482 = vmatpush3.msra.mxu1 %v281_v33  ;;  %v449_v43 = vpop.f32.mrf.mxu0 }
  0xd5   :  { %466 = vmatprep.subr.mxu0 %v280_v36  ;;  %479 = vmatprep.subr.mxu1 %v280_v36 }
  0xd6   :  { %467 = vmatpush3.msra.mxu0 %v280_v36  ;;  %483 = vmatpush3.msra.mxu1 %v280_v36  ;;  %v167_v44 = vpop.f32.mrf.mxu0 }
  0xd7   :  { %468 = vmatprep.subr.mxu0 %v279_v37  ;;  %480 = vmatprep.subr.mxu1 %v279_v37 }
  0xd8   :  { %469 = vmatpush3.msra.mxu0 %v279_v37  ;;  %484 = vmatpush3.msra.mxu1 %v279_v37 }
  0xd9   :  { %470 = vmatprep.subr.mxu0 %v278_v38  ;;  %481 = vmatprep.subr.mxu1 %v278_v38 }
  0xda   :  { %471 = vmatpush3.msra.mxu0 %v278_v38  ;;  %485 = vmatpush3.msra.mxu1 %v278_v38 }
  0xdb   :  { %473 = vmatmul.mubr.msk.f32.vlgmr.msra.gmra.mxu0 %vm180_vm1, %v283_v39  ;;  %476 = vmatmul.mubr.msk.f32.vlgmr.msra.gmra.mxu1 %vm180_vm1, %v285_v40 }
 0x19b   :  { %v474_v45 = vpop.f32.mrf.mxu0  ;;  %v477_v46 = vpop.f32.mrf.mxu1 }
 0x19c   :  { %v370_v47 = vadd.f32 %v474_v45, %v446_v41  ;;  %v380_v48 = vadd.f32 %v477_v46, %v449_v43 }
 0x19d   :  { %v364_v49 = vpop.f32.mrf.mxu0  ;;  %v374_v50 = vpop.f32.mrf.mxu1 }
 0x19e   :  { %385 = vst.msk [vmem:[%s614_s5 + $0x8] sm:$0xff] %vm383_vm4, %v370_v47  ;;  %v365_v51 = vadd.f32 %v364_v49, %v157_v42  ;;  %387 = vst.msk [vmem:[%s614_s5 + $0x18] sm:$0xff] %vm383_vm4, %v380_v48  ;;  %v375_v52 = vadd.f32 %v374_v50, %v167_v44 }
 0x1a0   :  { %384 = vst.msk [vmem:[%s614_s5] sm:$0xff] %vm383_vm4, %v365_v51  ;;  %386 = vst.msk [vmem:[%s614_s5 + $0x10] sm:$0xff] %vm383_vm4, %v375_v52 }

</bundles_post_ra>
